<compile_context>
chip_gen: v7x
topology: tpu7x:2x2x1
jax: 0.10.0
libtpu: 0.0.40
codegen_flags: <defaults>
</compile_context>

<pallas_src>
import math
import jax
import jax.numpy as jnp
from jax.experimental import pallas as pl
from jax.experimental.pallas import tpu as pltpu


def _multilinear_kernel(x_ref, w_ref, b_ref, o_ref, acc_ref):
    # x_ref: (tm, tk), w_ref: (tk, tn), b_ref: (1, tn), o_ref: (tm, tn), acc_ref: (tm, tn) f32
    k = pl.program_id(3)

    @pl.when(k == 0)
    def _init():
        acc_ref[...] = jnp.zeros_like(acc_ref)

    acc_ref[...] += jnp.dot(
        x_ref[...], w_ref[...], preferred_element_type=jnp.float32
    )

    @pl.when(k == pl.num_programs(3) - 1)
    def _finalize():
        # Bias added exactly once, at writeback.
        o_ref[...] = (acc_ref[...] + b_ref[...].astype(jnp.float32)).astype(o_ref.dtype)


def _pick_tile(dim, preferred):
    """Largest MXU/lane-aligned tile that evenly divides `dim`, else the full dim."""
    for t in preferred:
        if dim % t == 0 and dim >= t:
            return t
    return dim


def multilinear(x, weight, bias):
    """x: [E, N, K], weight: [E, K, F], bias: [E, 1, F] -> [E, N, F]."""
    E, N, K = x.shape
    _, _, F = weight.shape
    assert weight.shape == (E, K, F)
    assert bias.shape == (E, 1, F)

    # Tile sizes: MXU-friendly (multiples of 128/256) when the problem allows,
    # otherwise fall back to the full (small) dimension.
    tm = _pick_tile(N, (256, 128, 64, 32, 16, 8))
    tn = _pick_tile(F, (512, 256, 128))
    tk = _pick_tile(K, (512, 256, 128))

    grid = (E, N // tm, F // tn, K // tk)

    itemsize = jnp.dtype(x.dtype).itemsize
    cost = pl.CostEstimate(
        flops=2 * E * N * K * F,
        transcendentals=0,
        bytes_accessed=(E * N * K + E * K * F + E * F + E * N * F) * itemsize,
    )

    return pl.pallas_call(
        _multilinear_kernel,
        out_shape=jax.ShapeDtypeStruct((E, N, F), x.dtype),
        grid_spec=pltpu.PrefetchScalarGridSpec(
            num_scalar_prefetch=0,
            grid=grid,
            in_specs=[
                # x[e, i*tm:(i+1)*tm, k*tk:(k+1)*tk] -> (tm, tk)
                pl.BlockSpec((pl.Squeezed(), tm, tk), lambda e, i, j, k: (e, i, k)),
                # weight[e, k*tk:(k+1)*tk, j*tn:(j+1)*tn] -> (tk, tn)
                pl.BlockSpec((pl.Squeezed(), tk, tn), lambda e, i, j, k: (e, k, j)),
                # bias[e, :, j*tn:(j+1)*tn] -> (1, tn)
                pl.BlockSpec((pl.Squeezed(), 1, tn), lambda e, i, j, k: (e, 0, j)),
            ],
            # out[e, i*tm:(i+1)*tm, j*tn:(j+1)*tn] -> (tm, tn); resident across K.
            out_specs=pl.BlockSpec((pl.Squeezed(), tm, tn), lambda e, i, j, k: (e, i, j)),
            scratch_shapes=[pltpu.VMEM((tm, tn), jnp.float32)],
        ),
        compiler_params=pltpu.CompilerParams(
            dimension_semantics=("parallel", "parallel", "parallel", "arbitrary"),
        ),
        cost_estimate=cost,
    )(x, weight, bias)


def init_params(key, num_experts, in_features, out_features, dtype=jnp.float32):
    """Deterministic init mimicking the PyTorch module's kaiming_uniform_ / uniform_."""
    kw, kb = jax.random.split(key)
    # PyTorch _calculate_fan_in_and_fan_out for a [E, in, out] tensor:
    #   fan_in = size(1) * prod(sizes[2:]) = in_features * out_features
    fan_in = in_features * out_features
    gain = math.sqrt(2.0 / (1.0 + 5.0))          # kaiming with a=sqrt(5)
    w_bound = gain * math.sqrt(3.0 / fan_in)
    b_bound = 1.0 / math.sqrt(fan_in)
    weight = jax.random.uniform(
        kw, (num_experts, in_features, out_features), dtype,
        minval=-w_bound, maxval=w_bound)
    bias = jax.random.uniform(
        kb, (num_experts, 1, out_features), dtype,
        minval=-b_bound, maxval=b_bound)
    return weight, bias


if __name__ == "__main__":
    key = jax.random.PRNGKey(0)

    # --- Test 1: the module's small demo shapes (single-tile fallback path). ---
    num_experts, in_features, out_features, tokens = 4, 32, 32, 8
    kx, kp, krest = jax.random.split(key, 3)
    weight, bias = init_params(kp, num_experts, in_features, out_features)
    x = jax.random.normal(kx, (num_experts, tokens, in_features), jnp.float32)

    out = multilinear(x, weight, bias)
    out = jax.block_until_ready(out)
    ref = jnp.matmul(x, weight) + bias
    assert out.shape == (num_experts, tokens, out_features)
    assert jnp.allclose(out, ref, atol=1e-4, rtol=1e-4), "small-shape mismatch"

    # --- Test 2: larger shapes exercising the tiled / multi-K accumulation path. ---
    E2, N2, K2, F2 = 2, 256, 384, 256
    kx2, kp2 = jax.random.split(krest)
    w2, b2 = init_params(kp2, E2, K2, F2)
    x2 = jax.random.normal(kx2, (E2, N2, K2), jnp.float32)

    out2 = multilinear(x2, w2, b2)
    out2 = jax.block_until_ready(out2)
    ref2 = jnp.matmul(x2, w2) + b2
    assert out2.shape == (E2, N2, F2)
    assert jnp.allclose(out2, ref2, atol=2e-3, rtol=2e-3), "tiled-shape mismatch"

    print("KERNEL_OK")
</pallas_src>

<mosaic_0001>
module attributes {stable_mosaic.version = 11 : i64} {
  func.func @_multilinear_kernel(%arg0: i32, %arg1: i32, %arg2: i32, %arg3: i32, %arg4: memref<1x8x32xf32, #tpu.memory_space<vmem>>, %arg5: memref<1x32x32xf32, #tpu.memory_space<vmem>>, %arg6: memref<1x1x32xf32, #tpu.memory_space<vmem>>, %arg7: memref<1x8x32xf32, #tpu.memory_space<vmem>>, %arg8: memref<8x32xf32, #tpu.memory_space<vmem>>) attributes {dimension_semantics = [#tpu.dimension_semantics<parallel>, #tpu.dimension_semantics<parallel>, #tpu.dimension_semantics<parallel>, #tpu.dimension_semantics<arbitrary>], iteration_bounds = array<i64: 4, 1, 1, 1>, scalar_prefetch = 0 : i64, scratch_operands = 1 : i64, tpu.core_type = #tpu.core_type<tc>, window_params = [{transform_indices = @transform_0, window_bounds = array<i64: 1, 8, 32>}, {transform_indices = @transform_1, window_bounds = array<i64: 1, 32, 32>}, {transform_indices = @transform_2, window_bounds = array<i64: 1, 1, 32>}, {transform_indices = @transform_3, window_bounds = array<i64: 1, 8, 32>}]} {
    %c0_i32 = arith.constant 0 : i32
    %0 = arith.cmpi eq, %arg3, %c0_i32 : i32
    %1 = arith.extui %0 : i1 to i32
    %c0_i32_0 = arith.constant 0 : i32
    %2 = arith.cmpi ne, %1, %c0_i32_0 : i32
    scf.if %2 {
      %cst_12 = arith.constant 0.000000e+00 : f32
      %14 = vector.broadcast %cst_12 : f32 to vector<8x32xf32>
      %c0_13 = arith.constant 0 : index
      %c0_14 = arith.constant 0 : index
      %15 = vector.load %arg8[%c0_13, %c0_14] : memref<8x32xf32, #tpu.memory_space<vmem>>, vector<8x32xf32>
      tpu.vector_store %arg8[%c0_13, %c0_14], %14 {strides = array<i32>} : memref<8x32xf32, #tpu.memory_space<vmem>>, vector<8x32xf32>,
    } else {
    }
    %c0 = arith.constant 0 : index
    %c0_1 = arith.constant 0 : index
    %3 = vector.load %arg8[%c0, %c0_1] : memref<8x32xf32, #tpu.memory_space<vmem>>, vector<8x32xf32>
    %c0_2 = arith.constant 0 : index
    %c0_3 = arith.constant 0 : index
    %c0_4 = arith.constant 0 : index
    %4 = vector.load %arg4[%c0_2, %c0_3, %c0_4] : memref<1x8x32xf32, #tpu.memory_space<vmem>>, vector<1x8x32xf32>
    %5 = vector.shape_cast %4 : vector<1x8x32xf32> to vector<8x32xf32>
    %c0_5 = arith.constant 0 : index
    %c0_6 = arith.constant 0 : index
    %c0_7 = arith.constant 0 : index
    %6 = vector.load %arg5[%c0_5, %c0_6, %c0_7] : memref<1x32x32xf32, #tpu.memory_space<vmem>>, vector<1x32x32xf32>
    %7 = vector.shape_cast %6 : vector<1x32x32xf32> to vector<32x32xf32>
    %cst = arith.constant dense<0.000000e+00> : vector<8x32xf32>
    %8 = tpu.matmul %5, %7, %cst {dimension_numbers = #tpu.dot_dimension_numbers<[1], [0], [0], [1], [0, 0, 1, 1], [], []>} : vector<8x32xf32>, vector<32x32xf32>, vector<8x32xf32> -> vector<8x32xf32>
    %9 = arith.addf %3, %8 : vector<8x32xf32>
    %c0_8 = arith.constant 0 : index
    %c0_9 = arith.constant 0 : index
    %10 = vector.load %arg8[%c0_8, %c0_9] : memref<8x32xf32, #tpu.memory_space<vmem>>, vector<8x32xf32>
    tpu.vector_store %arg8[%c0_8, %c0_9], %9 {strides = array<i32>} : memref<8x32xf32, #tpu.memory_space<vmem>>, vector<8x32xf32>,
    %c0_i32_10 = arith.constant 0 : i32
    %11 = arith.cmpi eq, %arg3, %c0_i32_10 : i32
    %12 = arith.extui %11 : i1 to i32
    %c0_i32_11 = arith.constant 0 : i32
    %13 = arith.cmpi ne, %12, %c0_i32_11 : i32
    scf.if %13 {
      %c0_12 = arith.constant 0 : index
      %c0_13 = arith.constant 0 : index
      %14 = vector.load %arg8[%c0_12, %c0_13] : memref<8x32xf32, #tpu.memory_space<vmem>>, vector<8x32xf32>
      %c0_14 = arith.constant 0 : index
      %c0_15 = arith.constant 0 : index
      %c0_16 = arith.constant 0 : index
      %15 = vector.load %arg6[%c0_14, %c0_15, %c0_16] : memref<1x1x32xf32, #tpu.memory_space<vmem>>, vector<1x1x32xf32>
      %16 = vector.shape_cast %15 : vector<1x1x32xf32> to vector<1x32xf32>
      %17 = vector.broadcast %16 : vector<1x32xf32> to vector<8x32xf32>
      %18 = arith.addf %14, %17 : vector<8x32xf32>
      %c0_17 = arith.constant 0 : index
      %c0_18 = arith.constant 0 : index
      %c0_19 = arith.constant 0 : index
      %19 = vector.load %arg7[%c0_17, %c0_18, %c0_19] : memref<1x8x32xf32, #tpu.memory_space<vmem>>, vector<1x8x32xf32>
      %20 = vector.shape_cast %19 : vector<1x8x32xf32> to vector<8x32xf32>
      %21 = vector.shape_cast %18 : vector<8x32xf32> to vector<1x8x32xf32>
      tpu.vector_store %arg7[%c0_17, %c0_18, %c0_19], %21 {strides = array<i32>} : memref<1x8x32xf32, #tpu.memory_space<vmem>>, vector<1x8x32xf32>,
    } else {
    }
    return
  }
  func.func @transform_0(%arg0: i32, %arg1: i32, %arg2: i32, %arg3: i32) -> (i32, i32, i32) {
    %c0_i32 = arith.constant 0 : i32
    return %arg0, %arg1, %arg3 : i32, i32, i32
  }
  func.func @transform_1(%arg0: i32, %arg1: i32, %arg2: i32, %arg3: i32) -> (i32, i32, i32) {
    %c0_i32 = arith.constant 0 : i32
    return %arg0, %arg3, %arg2 : i32, i32, i32
  }
  func.func @transform_2(%arg0: i32, %arg1: i32, %arg2: i32, %arg3: i32) -> (i32, i32, i32) {
    %c0_i32 = arith.constant 0 : i32
    %c0_i32_0 = arith.constant 0 : i32
    return %arg0, %c0_i32, %arg2 : i32, i32, i32
  }
  func.func @transform_3(%arg0: i32, %arg1: i32, %arg2: i32, %arg3: i32) -> (i32, i32, i32) {
    %c0_i32 = arith.constant 0 : i32
    return %arg0, %arg1, %arg2 : i32, i32, i32
  }
}

</mosaic_0001>

<bundles_post_ra>
// kernel: tpu_custom_call.1
= control target key start
LH: loop header
LB: loop body
LE: loop exit
PB: predicated region body
PF: predicated region fallthrough
CT: control target
= control target key end

     0   :  { %8 = vsyncpa [#allocation4], 0  ;;  %s1063_s0 = inlined_call_operand.hbm [shape: f32[4,8,32], index: 0, kind: input, shape index: {}]   ;;  %s1064_s1 = inlined_call_operand.hbm [shape: f32[4,32,32], index: 1, kind: input, shape index: {}]   ;;  %s1065_s2 = inlined_call_operand.vmem [shape: f32[4,1,32], index: 2, kind: input, shape index: {}]   ;;  %s1066_s3 = inlined_call_operand.hbm [shape: f32[4,8,32], index: 3, kind: output, shape index: {}]  }
   0x1   :  { %10 = vsyncpa [#allocation4 + $0x1], 0 }
   0x2   :  { %11 = vsyncpa [#allocation7], 0 }
   0x3   :  { %13 = vsyncpa [#allocation7 + $0x1], 0 }
   0x4   :  { %14 = vsyncpa [#allocation5], 0 }
   0x5   :  { %16 = vsyncpa [#allocation5 + $0x1], 0  ;;  %s829_s12 = smov 0   ;;  %s831_s13 = smov 0  }
   0x6   :  { %s833_s14 = smov 0   ;;  %s835_s15 = smov 0  }
   0x7   :  { %s837_s16 = smov 0   ;;  %s839_s17 = smov 0  }
   0x8 LB: > { %s539_s18 = sadd.s32 4294967295, %s799_s17   ;;  %s540_s19 = sadd.s32 4294967294, %s799_s17   ;;  %s799_s17 = sphi %s839_s17, %s22_s17   ;;  %s795_s16 = sphi %s837_s16, %s1084_s16   ;;  %s791_s15 = sphi %s835_s15, %s1083_s15   ;;  %s787_s14 = sphi %s833_s14, %s1082_s14   ;;  %s783_s13 = sphi %s831_s13, %s1081_s13   ;;  %s779_s12 = sphi %s829_s12, %s1080_s12  }
   0x9   : > { %s48_s20 = sadd.s32 1, %s795_s16  ;;  %s59_s21 = sadd.s32 1, %s787_s14 }
   0xa   : > { %p50_p0 = scmp.ge.s32.totalorder %s48_s20, 4  ;;  %p66_p1 = scmp.ne.s32.totalorder %s787_s14, %s783_s13 }
   0xb   : > { %p67_p2 = scmp.eq.s32.totalorder %s799_s17, 0  ;;  %p72_p3 = scmp.ne.s32.totalorder %s783_s13, %s779_s12 }
   0xc   : > { %s1086_s20 = smov (%p50_p0, %s48_s20), 0  ;;  %p73_p5 = scmp.eq.s32.totalorder %s539_s18, 0 }
   0xd   : > { %p870_p4 = por %p67_p2, %p66_p1  ;;  %s52_s23 = ssub.s32 %s795_s16, %s1086_s20 }
   0xe   : > { %p158_p6 = scmp.eq.s32.totalorder %s539_s18, 3  ;;  %p57_p7 = scmp.eq.s32.totalorder %s52_s23, 0 }
   0xf   : > { %p876_p8 = por %p73_p5, %p72_p3  ;;  %p164_p10 = scmp.eq.s32.totalorder %s540_s19, 3 }
  0x10   : > { %p880_p9 = por %p158_p6, %p66_p1  ;;  %p598_p12 = scmp.lt.s32.totalorder %s799_s17, 4 }
  0x11   : > { %s1070_s24 = scalar_select %p876_p8, 1, 0 }
  0x12   : > { %s1071_s25 = scalar_select %p880_p9, 1, 0 }
  0x13   : > { %s885_s26 = scalar_select %p57_p7, %s787_s14, %s59_s21  }
  0x14   : > { %p887_p11 = por %p164_p10, %p72_p3  ;;  %s893_s28 = sand.u32 1, %s787_s14  }
  0x15   : > { %s543_s29 = sshll.u32 %s893_s28, 3  ;;  %s544_s30 = sshll.u32 %s795_s16, 7 }
  0x16   : > { %s1072_s27 = scalar_select %p887_p11, 1, 0 }
  0x17   : > { %s900_s6 = scalar_lea.hbm %s1063_s0, %s544_s30  ;;  %s188_s7 = scalar_lea.vmem [#allocation3], %s543_s29 }
  0x18   : > { %s197_s8 = sshll.u32 %s188_s7, 4  ;;  %p906_p13 = pnand %p598_p12, %p870_p4  ;;  %s902_s8 = int_to_ptr.vmem [resolvable:$true] %s197_s8 }
  0x19   : > { %s185_s10 = scalar_lea.sflag [#allocation4], %s893_s28  ;;  %s653_s11 = scalar_lea.hbm %s900_s6, 128 }
  0x1a   : > { %p654_p2 = scmp.ne.s32.totalorder %s900_s6, %s653_s11  ;;  %p655_p3 = pneg %p906_p13 }
  0x1b   : > { %s658_s21 = scalar_lea.hbm %s1063_s0, 512  ;;  %p659_p4 = scmp.lt.u32.totalorder %s900_s6, %s1063_s0 }
  0x1c   : > { %p656_p5 = pnand %p655_p3, %p654_p2  ;;  %p660_p7 = scmp.lt.u32.totalorder %s658_s21, %s653_s11 }
  0x1d   : > { %p662_p12 = scmp.lt.u32.totalorder %s653_s11, %s900_s6 }
  0x1e   : > { %p657_p6 = pneg %p656_p5  ;;  %p661_p10 = por %p660_p7, %p659_p4 }
  0x20   : > { %p663_p0 = por %p662_p12, %p661_p10 }
  0x22   : > { %p664_p1 = pnand %p663_p0, %p657_p6 }
  0x24   : > { %667 = shalt.err (!%p664_p1)
}
  0x25   : > { %s668_s29 = scalar_lea.vmem %s902_s8, 128  ;;  %s801_s30 = smov [#allocation3]  }
  0x26   : > { %p669_p2 = scmp.ne.s32.totalorder %s902_s8, %s668_s29  ;;  %s673_s4 = sshll.u32 %s801_s30, 4  ;;  %s674_s4 = int_to_ptr.vmem [resolvable:$false] %s673_s4 }
  0x27   : > { %s675_s5 = scalar_lea.vmem %s674_s4, 256  ;;  %p676_p9 = scmp.lt.s32.totalorder %s902_s8, %s674_s4 }
  0x28   : > { %p671_p5 = pnand %p669_p2, %p655_p3  ;;  %p677_p4 = scmp.lt.s32.totalorder %s675_s5, %s668_s29 }
  0x2a   : > { %p672_p11 = pneg %p671_p5  ;;  %p678_p7 = por %p677_p4, %p676_p9 }
  0x2c   : > { %p679_p10 = pnand %p678_p7, %p672_p11 }
  0x2e   : > { %682 = shalt.err (!%p679_p10)
}
  0x2f   : > { %590 = dma.hbm_to_vmem [thread:$0]  (!%p906_p13), %s900_s6, 128, %s902_s8, %s185_s10  }
  0x30   : > { %p1074_p0 = scmp.lt.s32.totalorder %s799_s17, 5  ;;  %p1075_p1 = scmp.ge.s32.totalorder %s799_s17, 1 }
  0x31   : > { %s545_s11 = sshll.u32 %s893_s28, 5  ;;  %s558_s18 = sshll.u32 %s795_s16, 9 }
  0x32   : > { %p942_p6 = pnand %p1075_p1, %p1074_p0  ;;  %s951_s22 = scalar_lea.hbm %s1064_s1, %s558_s18 }
  0x33   : > { %s208_s23 = scalar_lea.vmem [#allocation6], %s545_s11  ;;  %s205_s6 = scalar_lea.sflag [#allocation7], %s893_s28 }
  0x34   : > { %s218_s29 = sshll.u32 %s208_s23, 4  ;;  %s683_s8 = scalar_lea.hbm %s951_s22, 512  ;;  %s953_s29 = int_to_ptr.vmem [resolvable:$true] %s218_s29 }
  0x35   : > { %p684_p9 = scmp.ne.s32.totalorder %s951_s22, %s683_s8  ;;  %s688_s4 = scalar_lea.hbm %s1064_s1, 2048 }
  0x36   : > { %p689_p2 = scmp.lt.u32.totalorder %s951_s22, %s1064_s1  ;;  %p690_p5 = scmp.lt.u32.totalorder %s688_s4, %s683_s8 }
  0x37   : > { %p686_p11 = pnand %p684_p9, %p655_p3  ;;  %p692_p7 = scmp.lt.u32.totalorder %s683_s8, %s951_s22 }
  0x38   : > { %p691_p4 = por %p690_p5, %p689_p2 }
  0x39   : > { %p687_p12 = pneg %p686_p11 }
  0x3a   : > { %p693_p10 = por %p692_p7, %p691_p4 }
  0x3c   : > { %p694_p0 = pnand %p693_p10, %p687_p12 }
  0x3e   : > { %697 = shalt.err (!%p694_p0)
}
  0x3f   : > { %s698_s11 = scalar_lea.vmem %s953_s29, 512  ;;  %s802_s19 = smov [#allocation6]  }
  0x40   : > { %p699_p1 = scmp.ne.s32.totalorder %s953_s29, %s698_s11  ;;  %s703_s21 = sshll.u32 %s802_s19, 4  ;;  %s704_s21 = int_to_ptr.vmem [resolvable:$false] %s703_s21 }
  0x41   : > { %s705_s23 = scalar_lea.vmem %s704_s21, 1024  ;;  %p706_p8 = scmp.lt.s32.totalorder %s953_s29, %s704_s21 }
  0x42   : > { %p701_p9 = pnand %p699_p1, %p655_p3  ;;  %p707_p2 = scmp.lt.s32.totalorder %s705_s23, %s698_s11 }
  0x44   : > { %p702_p11 = pneg %p701_p9  ;;  %p708_p5 = por %p707_p2, %p706_p8 }
  0x46   : > { %p709_p4 = pnand %p708_p5, %p702_p11 }
  0x48   : > { %712 = shalt.err (!%p709_p4)
}
  0x49   : > { %s803_s8 = smov 128   ;;  %s804_s10 = smov 8  }
  0x4a   : > { %593 = dma.hbm_to_vmem [thread:$0]  (!%p906_p13), %s951_s22, 512, %s953_s29, %s205_s6, %s803_s8, %s803_s8, %s804_s10  }
  0x4b   : > { %239 = sbr.rel (%p942_p6) target bundleno = 335 (0x14f), region = 32  ;;  %s984_s30 = sand.u32 (!%p942_p6), 1, %s783_s13  }
  0x4c   : > { %s549_s4 = sshll.u32 (!%p942_p6), %s984_s30, 3  ;;  %s242_s5 = scalar_lea.sflag (!%p942_p6), [#allocation4], %s984_s30 }
  0x4d   : > { %s245_s18 = scalar_lea.vmem (!%p942_p6), [#allocation3], %s549_s4  ;;  %p1077_p8 = scmp.ne.s32.totalorder (!%p942_p6), %s1070_s24, 0 }
  0x52   : > { %766 = dma.done.wait (%p1077_p8), %s242_s5, 128  }
  0x53   : > { %768 = vsyncadd (%p1077_p8), %s242_s5, 4294967168  ;;  %s550_s28 = sshll.u32 %s984_s30, 5  ;;  %s251_s9 = scalar_lea.sflag [#allocation7], %s984_s30 }
  0x54   : > { %s254_s7 = scalar_lea.vmem [#allocation6], %s550_s28 }
  0x55   : > { %770 = dma.done.wait (%p1077_p8), %s251_s9, 512  }
  0x56   : > { %772 = vsyncadd (%p1077_p8), %s251_s9, 4294966784  ;;  %vm299_vm0 = vcmask 261120   ;;  %v805_v0 = vmov 0.0|0.0   ;;  %v806_v1 = vmov 0.0   ;;  %vm807_vm1 = vmmov 0   ;;  %v303_v2 = vld [vmem:[%s254_s7] sm:$0xff] }
  0x57   : > { %575 = vmatprep.subr.bf16.mxu0 %v805_v0  ;;  %300 = vst.msk [vmem:[#allocation2] sm:$0xff] %vm299_vm0, %v806_v1  ;;  %572 = vmatprep.mubr.msk.f32.mxu0 %vm807_vm1, %v806_v1  ;;  %v304_v3 = vld [vmem:[%s254_s7 + $0x8] sm:$0xff]  ;;  %v305_v4 = vld [vmem:[%s254_s7 + $0x10] sm:$0xff]  ;;  %v306_v6 = vld [vmem:[%s254_s7 + $0x18] sm:$0xff]  ;;  %p289_p13 = scmp.lt.s32.totalorder %s791_s15, 3  ;;  %s555_s11 = sshll.u32 %s791_s15, 7 }
  0x58   : > { %v576_v5 = vpack.c.bf16 %v304_v3, %v303_v2  ;;  %v579_v7 = vpack.c.bf16 %v306_v6, %v305_v4  ;;  %v302_v8 = vld [vmem:[%s245_s18] sm:$0xff]  ;;  %s287_s19 = scalar_lea.vmem [#allocation8], %s549_s4  ;;  %s1014_s10 = scalar_lea.hbm %s1066_s3, %s555_s11 }
  0x59   : > { %s290_s24 = scalar_select %p289_p13, %s791_s15, 3 }
  0x5a   : > { %577 = vmatpush3.bf16.msra.mxu0 %v576_v5  ;;  %s412_s21 = sshll.u32 %s287_s19, 4  ;;  %s397_s5 = scalar_lea.sflag [#allocation5], %s984_s30  ;;  %s1016_s21 = int_to_ptr.vmem [resolvable:$true] %s412_s21 }
  0x5b   : > { %578 = vmatprep.subr.bf16.mxu0 %v805_v0  ;;  %s294_s6 = scalar_lea.vmem %s1065_s2, %s290_s24  ;;  %s713_s18 = scalar_lea.vmem %s1016_s21, 128 }
  0x5c   : > { %v553_v13 = vld [vmem:[%s294_s6] ss:$0 sm:$0xff]  ;;  %p714_p3 = scmp.ne.s32.totalorder %s1016_s21, %s713_s18  ;;  %p1078_p6 = scmp.ne.s32.totalorder %s1071_s25, 0 }
  0x5d   : > { %s808_s15 = smov [#allocation8]  }
  0x5e   : > { %580 = vmatpush3.bf16.msra.mxu0 %v579_v7  ;;  %v301_v9 = vld [vmem:[#allocation2] sm:$0xff]  ;;  %p715_p12 = pnand %p714_p3, %p1078_p6  ;;  %s717_s4 = sshll.u32 %s808_s15, 4  ;;  %s718_s4 = int_to_ptr.vmem [resolvable:$false] %s717_s4 }
  0x5f   : > { %s719_s28 = scalar_lea.vmem %s718_s4, 256  ;;  %p720_p10 = scmp.lt.s32.totalorder %s1016_s21, %s718_s4 }
  0x60   : > { %p716_p7 = pneg %p715_p12  ;;  %p721_p0 = scmp.lt.s32.totalorder %s719_s28, %s713_s18 }
  0x61   : > { %573 = vmatmul.mubr.msk.f32.vlgmr.msra.gmra.mrb[0].mxu0 %vm299_vm0, %v302_v8 }
  0x62   : > { %p722_p1 = por %p721_p0, %p720_p10 }
  0x64   : > { %p723_p9 = pnand %p722_p1, %p716_p7 }
 0x134   : > { %v377_v10 = vpop.f32.mrb[0].mxu0 }
 0x135   : > { %v381_v11 = vadd.f32 %v377_v10, %v301_v9  ;;  %v574_v12 = vpop.f32.mrb[1].mxu0 }
 0x137   : > { %382 = vst.msk [vmem:[#allocation2] sm:$0xff] %vm299_vm0, %v381_v11 }
 0x13e   : > { %v386_v14 = vld [vmem:[#allocation2] sm:$0xff] }
 0x13f   : > { %v394_v15 = vadd.f32 %v553_v13, %v386_v14 }
 0x141   : > { %395 = vst.msk [vmem:[%s287_s19] sm:$0xff] %vm299_vm0, %v394_v15 }
 0x142   : > { %726 = shalt.err (!%p723_p9)
}
 0x143   : > { %s727_s30 = scalar_lea.hbm %s1014_s10, 128  ;;  %s731_s24 = scalar_lea.hbm %s1066_s3, 512 }
 0x144   : > { %p728_p11 = scmp.ne.s32.totalorder %s1014_s10, %s727_s30  ;;  %p732_p4 = scmp.lt.u32.totalorder %s1014_s10, %s1066_s3 }
 0x145   : > { %p733_p8 = scmp.lt.u32.totalorder %s731_s24, %s727_s30  ;;  %p735_p3 = scmp.lt.u32.totalorder %s727_s30, %s1014_s10 }
 0x146   : > { %p729_p2 = pnand %p728_p11, %p1078_p6 }
 0x147   : > { %p734_p13 = por %p733_p8, %p732_p4 }
 0x148   : > { %p730_p5 = pneg %p729_p2 }
 0x149   : > { %p736_p12 = por %p735_p3, %p734_p13 }
 0x14b   : > { %p737_p7 = pnand %p736_p12, %p730_p5 }
 0x14d   : > { %740 = shalt.err (!%p737_p7)
}
 0x14e   : > { %585 = dma.vmem_to_hbm [thread:$0]  (%p1078_p6), %s1016_s21, 128, %s1014_s10, %s397_s5  }
 0x14f PF: > { %p599_p10 = scmp.ge.s32.totalorder %s799_s17, 2  ;;  %s424_s6 = sand.u32 1, %s779_s12  }
 0x150   : > { %p1079_p0 = scmp.ne.s32.totalorder %s1072_s27, 0  ;;  %s425_s11 = scalar_lea.sflag [#allocation5], %s424_s6 }
 0x152   : > { %p595_p1 = pnand %p599_p10, %p1079_p0 }
 0x154   : > { %774 = dma.done.wait (!%p595_p1), %s425_s11, 128  }
 0x155   : > { %776 = vsyncadd (!%p595_p1), %s425_s11, 4294967168  ;;  %s22_s17 = sadd.s32 1, %s799_s17   ;;  %s1080_s12 = smov %s783_s13 }
 0x156   : > { %p19_p9 = scmp.ge.s32.totalorder %s22_s17, 6   ;;  %s1081_s13 = smov %s787_s14 }
 0x157   : > { %s1082_s14 = smov %s885_s26  ;;  %s1083_s15 = smov %s795_s16 }
 0x158   : > { %s1084_s16 = smov %s1086_s20  ;;  %21 = sbr.rel (!%p19_p9) target bundleno = 8 (0x8), region = 101 }
 0x15f   :  { %430 = vsyncpa [#allocation4], 1 }
 0x160   :  { %432 = vsyncpa [#allocation4 + $0x1], 1 }
 0x161   :  { %433 = vsyncpa [#allocation7], 1 }
 0x162   :  { %435 = vsyncpa [#allocation7 + $0x1], 1 }
 0x163   :  { %436 = vsyncpa [#allocation5], 1 }
 0x164   :  { %438 = vsyncpa [#allocation5 + $0x1], 1 }

</bundles_post_ra>
